<compile_context>
chip_gen: v7x
topology: tpu7x:2x2x1
jax: 0.10.0
libtpu: 0.0.40
codegen_flags: <defaults>
</compile_context>

<pallas_src>
import jax
import jax.numpy as jnp
from jax.experimental import pallas as pl
from jax.experimental.pallas import tpu as pltpu

_LANE = 128


# ----------------------------------------------------------------------------
# Kernel: one (Cout, Cin) x (Cin, T) matmul + bias per (batch, spatial-strip).
# ----------------------------------------------------------------------------
def _outconv_kernel(x_ref, w_ref, b_ref, o_ref):
    # x_ref: (1, Cin, T)  w_ref: (Cout, Cin)  b_ref: (Cout, 1)  o_ref: (1, Cout, T)
    y = jnp.dot(w_ref[...], x_ref[0], preferred_element_type=jnp.float32)
    o_ref[0] = (y + b_ref[...]).astype(o_ref.dtype)


def _ceil_to(x, m):
    return -(-x // m) * m


def _choose_spatial_tile(hw, cin, cout, n_batch, x_bytes, out_bytes,
                         vmem_budget_bytes=16 << 20, min_grid_steps=4):
    """Pick the per-step spatial tile T (a multiple of 128 lanes)."""
    hw_pad = _ceil_to(hw, _LANE)
    # VMEM bytes per spatial lane: double-buffered activations + outputs.
    bytes_per_lane = 2 * (cin * x_bytes + cout * out_bytes)
    t = (vmem_budget_bytes // bytes_per_lane) // _LANE * _LANE
    t = max(_LANE, min(t, hw_pad))
    # Keep >=4 grid steps: pipeline depth + work for both v7x TensorCores.
    while t > _LANE and n_batch * (-(-hw // t)) < min_grid_steps:
        t = max(_LANE, (t // 2) // _LANE * _LANE)
    return t


def out_conv(x_nchw, weight, bias):
    """1x1 conv.  x: (N, Cin, H, W); weight: (Cout, Cin, 1, 1) (PyTorch layout);
    bias: (Cout,).  Returns (N, Cout, H, W) in x's dtype."""
    N, Cin, H, W = x_nchw.shape
    Cout = weight.shape[0]
    HW = H * W

    x_dtype = x_nchw.dtype
    x_bytes = x_nchw.dtype.itemsize
    out_bytes = x_bytes

    # Weights in the activation dtype (tiny tensor; MXU takes bf16 natively),
    # bias in fp32 so it adds straight onto the fp32 accumulator.
    w2 = weight.reshape(Cout, Cin).astype(x_dtype)
    b2 = bias.reshape(Cout, 1).astype(jnp.float32)

    # Free reshape (NCHW is contiguous): no transpose, no pad, no cast.
    x = x_nchw.reshape(N, Cin, HW)

    T = _choose_spatial_tile(HW, Cin, Cout, N, x_bytes, out_bytes)
    grid = (N, -(-HW // T))

    cost = pl.CostEstimate(
        flops=2 * N * Cout * Cin * HW,
        bytes_accessed=(N * Cin * HW * x_bytes          # activations in
                        + Cout * Cin * x_bytes          # weights
                        + Cout * 4                      # bias
                        + N * Cout * HW * out_bytes),   # output
        transcendentals=0)

    out = pl.pallas_call(
        _outconv_kernel,
        out_shape=jax.ShapeDtypeStruct((N, Cout, HW), x_dtype),
        grid=grid,
        in_specs=[
            # Activations: lane-dense spatial strips.  (If profiling on v5e
            # shows exposed DMA, add pipeline_mode=pl.Buffered(3) here.)
            pl.BlockSpec((1, Cin, T), lambda n, j: (n, 0, j)),
            pl.BlockSpec((Cout, Cin), lambda n, j: (0, 0)),   # resident weights
            pl.BlockSpec((Cout, 1), lambda n, j: (0, 0)),     # resident bias
        ],
        out_specs=pl.BlockSpec((1, Cout, T), lambda n, j: (n, 0, j)),
        compiler_params=pltpu.CompilerParams(
            dimension_semantics=("parallel", "parallel")),
        cost_estimate=cost,
    )(x, w2, b2)

    return out.reshape(N, Cout, H, W)


if __name__ == "__main__":
    # Small shapes consistent with OutConv: decoder features -> class logits.
    N, Cin, H, W = 2, 4, 16, 16
    Cout = 2

    key = jax.random.PRNGKey(0)
    k0, k1, k2 = jax.random.split(key, 3)

    x = jax.random.normal(k0, (N, Cin, H, W), dtype=jnp.float32)
    # Weights in PyTorch nn.Conv2d layout: (Cout, Cin, 1, 1), bias (Cout,).
    w = 0.1 * jax.random.normal(k1, (Cout, Cin, 1, 1), dtype=jnp.float32)
    b = 0.1 * jax.random.normal(k2, (Cout,), dtype=jnp.float32)

    out = jax.jit(out_conv)(x, w, b)
    out = jax.block_until_ready(out)
    assert out.shape == (N, Cout, H, W)

    # Reference: 1x1 conv == per-pixel channel matmul + bias.
    ref = jnp.einsum("nchw,oc->nohw", x, w.reshape(Cout, Cin)) \
        + b.reshape(1, Cout, 1, 1)
    assert bool(jnp.allclose(out, ref, atol=1e-5, rtol=1e-5))

    print("KERNEL_OK")
</pallas_src>

<mosaic_0001>
module attributes {stable_mosaic.version = 11 : i64} {
  func.func @_outconv_kernel(%arg0: i32, %arg1: i32, %arg2: memref<1x4x128xf32, #tpu.memory_space<vmem>>, %arg3: memref<2x4xf32, #tpu.memory_space<vmem>>, %arg4: memref<2x1xf32, #tpu.memory_space<vmem>>, %arg5: memref<1x2x128xf32, #tpu.memory_space<vmem>>) attributes {dimension_semantics = [#tpu.dimension_semantics<parallel>, #tpu.dimension_semantics<parallel>], iteration_bounds = array<i64: 2, 2>, scalar_prefetch = 0 : i64, scratch_operands = 0 : i64, tpu.core_type = #tpu.core_type<tc>, window_params = [{transform_indices = @transform_0, window_bounds = array<i64: 1, 4, 128>}, {pipeline_mode = #tpu.pipeline_mode<synchronous>, transform_indices = @transform_1, window_bounds = array<i64: 2, 4>}, {pipeline_mode = #tpu.pipeline_mode<synchronous>, transform_indices = @transform_2, window_bounds = array<i64: 2, 1>}, {transform_indices = @transform_3, window_bounds = array<i64: 1, 2, 128>}]} {
    %c0 = arith.constant 0 : index
    %c0_0 = arith.constant 0 : index
    %0 = vector.load %arg3[%c0, %c0_0] : memref<2x4xf32, #tpu.memory_space<vmem>>, vector<2x4xf32>
    %c0_1 = arith.constant 0 : index
    %c0_2 = arith.constant 0 : index
    %c0_3 = arith.constant 0 : index
    %1 = vector.load %arg2[%c0_1, %c0_2, %c0_3] : memref<1x4x128xf32, #tpu.memory_space<vmem>>, vector<1x4x128xf32>
    %2 = vector.shape_cast %1 : vector<1x4x128xf32> to vector<4x128xf32>
    %cst = arith.constant dense<0.000000e+00> : vector<2x128xf32>
    %3 = tpu.matmul %0, %2, %cst {dimension_numbers = #tpu.dot_dimension_numbers<[1], [0], [0], [1], [0, 0, 1, 1], [], []>} : vector<2x4xf32>, vector<4x128xf32>, vector<2x128xf32> -> vector<2x128xf32>
    %c0_4 = arith.constant 0 : index
    %c0_5 = arith.constant 0 : index
    %4 = vector.load %arg4[%c0_4, %c0_5] : memref<2x1xf32, #tpu.memory_space<vmem>>, vector<2x1xf32>
    %5 = vector.broadcast %4 : vector<2x1xf32> to vector<2x128xf32>
    %6 = arith.addf %3, %5 : vector<2x128xf32>
    %c0_6 = arith.constant 0 : index
    %c0_7 = arith.constant 0 : index
    %c0_8 = arith.constant 0 : index
    %7 = vector.load %arg5[%c0_6, %c0_7, %c0_8] : memref<1x2x128xf32, #tpu.memory_space<vmem>>, vector<1x2x128xf32>
    %8 = vector.shape_cast %7 : vector<1x2x128xf32> to vector<2x128xf32>
    %9 = vector.shape_cast %6 : vector<2x128xf32> to vector<1x2x128xf32>
    tpu.vector_store %arg5[%c0_6, %c0_7, %c0_8], %9 {strides = array<i32>} : memref<1x2x128xf32, #tpu.memory_space<vmem>>, vector<1x2x128xf32>,
    return
  }
  func.func @transform_0(%arg0: i32, %arg1: i32) -> (i32, i32, i32) {
    %c0_i32 = arith.constant 0 : i32
    %c0_i32_0 = arith.constant 0 : i32
    return %arg0, %c0_i32, %arg1 : i32, i32, i32
  }
  func.func @transform_1(%arg0: i32, %arg1: i32) -> (i32, i32) {
    %c0_i32 = arith.constant 0 : i32
    %c0_i32_0 = arith.constant 0 : i32
    %c0_i32_1 = arith.constant 0 : i32
    return %c0_i32, %c0_i32_0 : i32, i32
  }
  func.func @transform_2(%arg0: i32, %arg1: i32) -> (i32, i32) {
    %c0_i32 = arith.constant 0 : i32
    %c0_i32_0 = arith.constant 0 : i32
    %c0_i32_1 = arith.constant 0 : i32
    return %c0_i32, %c0_i32_0 : i32, i32
  }
  func.func @transform_3(%arg0: i32, %arg1: i32) -> (i32, i32, i32) {
    %c0_i32 = arith.constant 0 : i32
    %c0_i32_0 = arith.constant 0 : i32
    return %arg0, %c0_i32, %arg1 : i32, i32, i32
  }
}

</mosaic_0001>

<bundles_post_ra>
// kernel: out_conv.1
= control target key start
LH: loop header
LB: loop body
LE: loop exit
PB: predicated region body
PF: predicated region fallthrough
CT: control target
= control target key end

     0   :  { %s502_s12 = smov 0   ;;  %s504_s13 = smov 0   ;;  %s559_s0 = inlined_call_operand.vmem [shape: f32[2,4,256], index: 0, kind: input, shape index: {}]   ;;  %s560_s1 = inlined_call_operand.vmem [shape: f32[2,4], index: 1, kind: input, shape index: {}]   ;;  %s561_s2 = inlined_call_operand.vmem [shape: f32[2,1], index: 2, kind: input, shape index: {}]   ;;  %s562_s3 = inlined_call_operand.vmem [shape: f32[2,2,256], index: 3, kind: output, shape index: {}]  }
   0x1   :  { %s506_s14 = smov 0   ;;  %s508_s15 = smov 0  }
   0x2   :  { %s510_s16 = smov 0  }
   0x3 LB: > { %s22_s17 = sadd.s32 1, %s469_s14  ;;  %s25_s18 = sadd.s32 1, %s473_s15  ;;  %s477_s16 = sphi %s510_s16, %s13_s16   ;;  %s473_s15 = sphi %s508_s15, %s566_s15   ;;  %s469_s14 = sphi %s506_s14, %s565_s14   ;;  %s465_s13 = sphi %s504_s13, %s564_s13   ;;  %s461_s12 = sphi %s502_s12, %s563_s12  }
   0x4   : > { %p23_p0 = scmp.ge.s32.totalorder %s22_s17, 2  ;;  %p379_p1 = scmp.ge.s32.totalorder %s477_s16, 1 }
   0x5   : > { %p156_p2 = scmp.lt.s32.totalorder %s477_s16, 5 }
   0x6   : > { %s568_s17 = smov (%p23_p0, %s22_s17), 0  ;;  %s570_s18 = smov (!%p23_p0, %s25_s18), %s473_s15 }
   0x7   : > { %p157_p3 = pnand %p379_p1, %p156_p2  ;;  %p27_p4 = scmp.ge.s32.totalorder %s570_s18, 2 }
   0x8   : > { %p186_p5 = scmp.lt.s32.totalorder (!%p157_p3), %s465_s13, 1  ;;  %p188_p6 = scmp.lt.s32.totalorder (!%p157_p3), %s461_s12, 1  ;;  %v479_v0 = vmov (!%p157_p3), 0.0   ;;  %vm480_vm0 = vmmov (!%p157_p3), 0   ;;  %v204_v1 = vld [vmem:[%s561_s2] sm:$0x3] (!%p157_p3) }
   0x9   : > { %s572_s18 = smov (%p27_p4, %s570_s18), 0  ;;  %160 = sbr.rel (%p157_p3) target bundleno = 238 (0xee), region = 32 }
   0xa   : > { %390 = vmatprep.subr.mxu0 (!%p157_p3), %v479_v0  ;;  %392 = vmatprep.mubr.msk.f32.mxu0 (!%p157_p3), %vm480_vm0, %v479_v0  ;;  %v481_v2 = vmov (!%p157_p3), 0   ;;  %vm214_vm1 = vcmask (!%p157_p3), 1043456   ;;  %v202_v3 = vld [vmem:[%s560_s1] sm:$0x3] (!%p157_p3)  ;;  %vm210_vm2 = vcmask (!%p157_p3), 31744  }
   0xb   : > { %438 = vset.pattern.permute.xlu0 (!%p157_p3), %v481_v2 }
   0xc   : > { %207 = vperm.xlu0 (!%p157_p3), %438, %v204_v1  }
  0x10   : > { %s574_s13 = smov (!%p186_p5, %s465_s13), 1  ;;  %s576_s12 = smov (!%p188_p6, %s461_s12), 1 }
  0x11   : > { %s380_s21 = sshll.u32 %s574_s13, 1 }
  0x12   : > { %s191_s22 = sadd.s32 %s380_s21, %s576_s12 }
  0x13   : > { %s381_s23 = sshll.u32 %s191_s22, 2  ;;  %s383_s29 = sshll.u32 %s191_s22, 1 }
  0x14   : > { %s193_s26 = scalar_lea.vmem %s559_s0, %s381_s23  ;;  %s201_s5 = scalar_lea.vmem %s562_s3, %s383_s29 }
  0x15   : > { %v203_v4 = vld [vmem:[%s193_s26] sm:$0xf] }
  0x16   : > { %391 = vmatpush3.msk.msra.mxu0 %vm214_vm1, %v203_v4 }
  0x17   : > { %393 = vmatmul.mubr.msk.f32.vlgmr.msra.gmra.mrb[0].mxu0 %vm210_vm2, %v202_v3 }
  0x8b   : > { %v208_v5 = vpop.permute.xlu0 %207 }
  0xea   : > { %v284_v6 = vpop.f32.mrb[0].mxu0 }
  0xeb   : > { %v285_v7 = vadd.f32 %v284_v6, %v208_v5  ;;  %v394_v8 = vpop.f32.mrb[1].mxu0 }
  0xed   : > { %288 = vst [vmem:[%s201_s5] sm:$0x3] %v285_v7 }
  0xee PF: > { %s13_s16 = sadd.s32 1, %s477_s16   ;;  %s563_s12 = smov %s469_s14 }
  0xef   : > { %p10_p7 = scmp.ge.s32.totalorder %s13_s16, 6   ;;  %s564_s13 = smov %s473_s15 }
  0xf0   : > { %s565_s14 = smov %s568_s17  ;;  %s566_s15 = smov %s572_s18 }
  0xf1   :  { %12 = sbr.rel (!%p10_p7) target bundleno = 3 (0x3), region = 62 }

</bundles_post_ra>
